<compile_context>
chip_gen: v7x
topology: tpu7x:2x2x1
jax: 0.10.0
libtpu: 0.0.40
codegen_flags: <defaults>
</compile_context>

<pallas_src>
import jax
import jax.numpy as jnp
from jax.experimental import pallas as pl
from jax.experimental.pallas import tpu as pltpu

P = 0.1                                   # dropout probability (DropoutActivation.p)
_SCALE = 1.0 / (1.0 - P)                  # inverted-dropout scale
_THRESH_24 = int(round(P * (1 << 24)))    # drop iff 24-bit uniform < threshold

_HW_PRNG_OK = None                        # tri-state: None = not yet probed


# ----------------------------------------------------------------------------
# Kernels
# ----------------------------------------------------------------------------
def _dropout_relu_kernel_hw(seed_ref, x_ref, o_ref):
    """ReLU + inverted dropout using the hardware PRNG (preferred path)."""
    x = x_ref[...]
    act = jnp.maximum(x, jnp.zeros_like(x))                 # ReLU

    # Seed per grid step so tiles / megacore shards get independent streams.
    pltpu.prng_seed(seed_ref[0], pl.program_id(0))
    bits = pltpu.prng_random_bits(act.shape)
    if bits.dtype != jnp.uint32:
        bits = pltpu.bitcast(bits, jnp.uint32)
    r24 = bits >> 8                                          # top 24 uniform bits
    keep = r24 >= jnp.uint32(_THRESH_24)                     # keep w.p. (1 - p)

    scale = jnp.asarray(_SCALE, dtype=act.dtype)
    o_ref[...] = jnp.where(keep, act * scale, jnp.zeros_like(act)).astype(o_ref.dtype)


def _dropout_relu_kernel_sw(seed_ref, x_ref, o_ref):
    """Fallback: cheap counter-based xorshift-multiply hash (no HW PRNG)."""
    x = x_ref[...]
    act = jnp.maximum(x, jnp.zeros_like(x))                  # ReLU

    br, ln = x_ref.shape
    # Per-tile base offset is a scalar (scalar unit -> free slot).
    base = pl.program_id(0) * (br * ln)
    row = jax.lax.broadcasted_iota(jnp.int32, (br, ln), 0)
    lane = jax.lax.broadcasted_iota(jnp.int32, (br, ln), 1)
    idx = row * ln + lane + base                              # global element index
    h = (idx ^ seed_ref[0]).astype(jnp.uint32)
    # Single-multiply finalizer with true logical shifts (no mask ANDs).
    h = h ^ (h >> 16)
    h = h * jnp.uint32(0x7FEB352D)
    h = h ^ (h >> 15)
    r24 = h >> 8
    keep = r24 >= jnp.uint32(_THRESH_24)

    scale = jnp.asarray(_SCALE, dtype=act.dtype)
    o_ref[...] = jnp.where(keep, act * scale, jnp.zeros_like(act)).astype(o_ref.dtype)


# ----------------------------------------------------------------------------
# Host-side helpers
# ----------------------------------------------------------------------------
def _max_block_rows_and_vmem():
    """Generation-aware tile sizing (rows of 1024 f32 lanes per block)."""
    try:
        kind = jax.devices()[0].device_kind.lower()
    except Exception:
        kind = ""
    if "v5" in kind:
        return 512, None            # 8 MiB live; fits v5e's 16 MiB scoped default
    if "v6" in kind:
        return 1024, None           # 16 MiB live; fits v6e's 32 MiB scoped default
    # v7x / unknown: bigger tiles, raise the scoped-VMEM limit (<= 64 MiB phys).
    return 2048, 48 << 20


def _choose_tiling(total, max_block_rows):
    """Return (lanes, rows, block_rows, padded_rows); avoid padding when possible."""
    for lanes in (1024, 512, 256, 128):
        if total % lanes:
            continue
        rows = total // lanes
        if rows <= max_block_rows:
            return lanes, rows, rows, rows              # single block == full array
        br = max_block_rows
        while br >= 8:
            if rows % br == 0:
                return lanes, rows, br, rows            # exact tiling, no padding
            br //= 2
    # Ragged fallback: pad (one extra HBM copy each way; rare shapes only).
    lanes = 128
    rows = pl.cdiv(total, lanes)
    if rows <= max_block_rows:
        return lanes, rows, rows, rows
    br = max_block_rows
    padded_rows = pl.cdiv(rows, br) * br
    return lanes, rows, br, padded_rows


def _invoke(kernel_fn, seed_arr, x2d, block_rows, lanes, grid_rows, vmem_limit):
    cp_kwargs = dict(dimension_semantics=("parallel",))    # megacore sharding
    if vmem_limit is not None:
        cp_kwargs["vmem_limit_bytes"] = vmem_limit
    return pl.pallas_call(
        kernel_fn,
        grid=(grid_rows,),
        out_shape=jax.ShapeDtypeStruct(x2d.shape, x2d.dtype),
        in_specs=[
            pl.BlockSpec(memory_space=pltpu.MemorySpace.SMEM),       # seed scalar
            pl.BlockSpec((block_rows, lanes), lambda i: (i, 0)),     # streamed tiles
        ],
        out_specs=pl.BlockSpec((block_rows, lanes), lambda i: (i, 0)),
        compiler_params=pltpu.CompilerParams(**cp_kwargs),
    )(seed_arr, x2d)


def dropout_activation(x: jax.Array, seed: int = 0, step: int = 0,
                       training: bool = True) -> jax.Array:
    """ReLU followed by inverted dropout (p=0.1); matches DropoutActivation.forward."""
    if not training:
        return jnp.maximum(x, 0)                    # nn.Dropout is identity in eval

    total = x.size
    if total >= (1 << 31):
        raise ValueError("dropout_activation: tensor too large for int32 RNG counter")

    orig_shape = x.shape
    flat = x.reshape(-1)

    max_block_rows, vmem_limit = _max_block_rows_and_vmem()
    lanes, rows, block_rows, padded_rows = _choose_tiling(total, max_block_rows)
    padded_total = padded_rows * lanes
    if padded_total != total:
        flat = jnp.pad(flat, (0, padded_total - total))
    x2d = flat.reshape(padded_rows, lanes)
    grid_rows = padded_rows // block_rows

    # Fold a step counter into the seed so masks differ across training steps.
    seed_arr = jnp.asarray([(seed * 2654435761 + step) & 0x7FFFFFFF], dtype=jnp.int32)

    global _HW_PRNG_OK
    out2d = None
    if _HW_PRNG_OK is None:
        try:
            out2d = _invoke(_dropout_relu_kernel_hw, seed_arr, x2d,
                            block_rows, lanes, grid_rows, vmem_limit)
            jax.block_until_ready(out2d)
            _HW_PRNG_OK = True
        except Exception:
            _HW_PRNG_OK = False
            out2d = None
    elif _HW_PRNG_OK:
        out2d = _invoke(_dropout_relu_kernel_hw, seed_arr, x2d,
                        block_rows, lanes, grid_rows, vmem_limit)
    if out2d is None:
        out2d = _invoke(_dropout_relu_kernel_sw, seed_arr, x2d,
                        block_rows, lanes, grid_rows, vmem_limit)

    if padded_total == total:
        return out2d.reshape(orig_shape)
    return out2d.reshape(-1)[:total].reshape(orig_shape)


# ----------------------------------------------------------------------------
# Demo / self-check
# ----------------------------------------------------------------------------
if __name__ == "__main__":
    key = jax.random.PRNGKey(0)
    # Small NCHW input consistent with how the module is used (conv features).
    x = jax.random.normal(key, (2, 4, 16, 16), dtype=jnp.float32)

    y = dropout_activation(x, seed=0, step=0)
    y = jax.block_until_ready(y)

    # Sanity checks.
    assert y.shape == x.shape and y.dtype == x.dtype
    assert bool(jnp.all(y >= 0.0))                        # ReLU => non-negative
    relu_scaled = jnp.maximum(x, 0.0) * (1.0 / (1.0 - P))
    nz = y != 0.0
    # Every non-zero output equals relu(x) / (1 - p).
    assert bool(jnp.all(jnp.where(nz, jnp.abs(y - relu_scaled) < 1e-5, True)))
    # A plausible fraction of strictly-positive inputs was actually dropped.
    pos = x > 0.0
    dropped = jnp.logical_and(pos, y == 0.0)
    frac = float(jnp.sum(dropped) / jnp.maximum(jnp.sum(pos), 1))
    assert 0.01 < frac < 0.35

    # Different seeds / steps give different masks.
    y2 = jax.block_until_ready(dropout_activation(x, seed=1, step=0))
    assert bool(jnp.any((y == 0.0) != (y2 == 0.0)))

    print("KERNEL_OK")
</pallas_src>

<mosaic_0001>
module attributes {stable_mosaic.version = 11 : i64} {
  func.func @_dropout_relu_kernel_hw(%arg0: i32, %arg1: memref<1xi32, #tpu.memory_space<smem>>, %arg2: memref<2x1024xf32, #tpu.memory_space<vmem>>, %arg3: memref<2x1024xf32, #tpu.memory_space<vmem>>) attributes {dimension_semantics = [#tpu.dimension_semantics<parallel>], iteration_bounds = array<i64: 1>, scalar_prefetch = 0 : i64, scratch_operands = 0 : i64, tpu.core_type = #tpu.core_type<tc>, window_params = [{transform_indices = @transform_0, window_bounds = array<i64: 1>}, {transform_indices = @transform_1, window_bounds = array<i64: 2, 1024>}, {transform_indices = @transform_2, window_bounds = array<i64: 2, 1024>}]} {
    %c0 = arith.constant 0 : index
    %c0_0 = arith.constant 0 : index
    %0 = vector.load %arg2[%c0, %c0_0] : memref<2x1024xf32, #tpu.memory_space<vmem>>, vector<2x1024xf32>
    %cst = arith.constant 0.000000e+00 : f32
    %1 = vector.broadcast %cst : f32 to vector<2x1024xf32>
    %2 = arith.maximumf %0, %1 : vector<2x1024xf32>
    %c0_1 = arith.constant 0 : index
    %3 = memref.load %arg1[%c0_1] : memref<1xi32, #tpu.memory_space<smem>>
    "tpu.prng_set_seed_32"(%3, %arg0) : (i32, i32) -> ()
    %4 = "tpu.prng_random_bits"() : () -> vector<2x1024xi32>
    %5 = tpu.bitcast %4 : vector<2x1024xi32> -> vector<2x1024xi32>
    %c8_i32 = arith.constant 8 : i32
    %6 = vector.broadcast %c8_i32 : i32 to vector<2x1024xi32>
    %7 = arith.shrui %5, %6 : vector<2x1024xi32>
    %c1677722_i32 = arith.constant 1677722 : i32
    %8 = vector.broadcast %c1677722_i32 : i32 to vector<2x1024xi32>
    %9 = arith.cmpi uge, %7, %8 : vector<2x1024xi32>
    %cst_2 = arith.constant 1.11111116 : f32
    %10 = vector.broadcast %cst_2 : f32 to vector<2x1024xf32>
    %11 = arith.mulf %2, %10 : vector<2x1024xf32>
    %cst_3 = arith.constant 0.000000e+00 : f32
    %12 = vector.broadcast %cst_3 : f32 to vector<2x1024xf32>
    %13 = arith.select %9, %11, %12 : vector<2x1024xi1>, vector<2x1024xf32>
    %c0_4 = arith.constant 0 : index
    %c0_5 = arith.constant 0 : index
    %14 = vector.load %arg3[%c0_4, %c0_5] : memref<2x1024xf32, #tpu.memory_space<vmem>>, vector<2x1024xf32>
    tpu.vector_store %arg3[%c0_4, %c0_5], %13 {strides = array<i32>} : memref<2x1024xf32, #tpu.memory_space<vmem>>, vector<2x1024xf32>,
    return
  }
  func.func @transform_0(%arg0: i32) -> i32 {
    %c0_i32 = arith.constant 0 : i32
    %c0_i32_0 = arith.constant 0 : i32
    return %c0_i32 : i32
  }
  func.func @transform_1(%arg0: i32) -> (i32, i32) {
    %c0_i32 = arith.constant 0 : i32
    %c0_i32_0 = arith.constant 0 : i32
    return %arg0, %c0_i32 : i32, i32
  }
  func.func @transform_2(%arg0: i32) -> (i32, i32) {
    %c0_i32 = arith.constant 0 : i32
    %c0_i32_0 = arith.constant 0 : i32
    return %arg0, %c0_i32 : i32, i32
  }
}

module attributes {stable_mosaic.version = 11 : i64} {
  func.func @_dropout_relu_kernel_sw(%arg0: i32, %arg1: memref<1xi32, #tpu.memory_space<smem>>, %arg2: memref<2x1024xf32, #tpu.memory_space<vmem>>, %arg3: memref<2x1024xf32, #tpu.memory_space<vmem>>) attributes {dimension_semantics = [#tpu.dimension_semantics<parallel>], iteration_bounds = array<i64: 1>, scalar_prefetch = 0 : i64, scratch_operands = 0 : i64, tpu.core_type = #tpu.core_type<tc>, window_params = [{transform_indices = @transform_0, window_bounds = array<i64: 1>}, {transform_indices = @transform_1, window_bounds = array<i64: 2, 1024>}, {transform_indices = @transform_2, window_bounds = array<i64: 2, 1024>}]} {
    %c0 = arith.constant 0 : index
    %c0_0 = arith.constant 0 : index
    %0 = vector.load %arg2[%c0, %c0_0] : memref<2x1024xf32, #tpu.memory_space<vmem>>, vector<2x1024xf32>
    %cst = arith.constant 0.000000e+00 : f32
    %1 = vector.broadcast %cst : f32 to vector<2x1024xf32>
    %2 = arith.maximumf %0, %1 : vector<2x1024xf32>
    %c2048_i32 = arith.constant 2048 : i32
    %3 = arith.muli %arg0, %c2048_i32 : i32
    %4 = tpu.iota {dimensions = array<i32: 0>} : vector<2x1024xi32>
    %5 = tpu.iota {dimensions = array<i32: 1>} : vector<2x1024xi32>
    %c1024_i32 = arith.constant 1024 : i32
    %6 = vector.broadcast %c1024_i32 : i32 to vector<2x1024xi32>
    %7 = arith.muli %4, %6 : vector<2x1024xi32>
    %8 = arith.addi %7, %5 : vector<2x1024xi32>
    %9 = vector.broadcast %3 : i32 to vector<2x1024xi32>
    %10 = arith.addi %8, %9 : vector<2x1024xi32>
    %c0_1 = arith.constant 0 : index
    %11 = memref.load %arg1[%c0_1] : memref<1xi32, #tpu.memory_space<smem>>
    %12 = vector.broadcast %11 : i32 to vector<2x1024xi32>
    %13 = arith.xori %10, %12 : vector<2x1024xi32>
    %c16_i32 = arith.constant 16 : i32
    %14 = vector.broadcast %c16_i32 : i32 to vector<2x1024xi32>
    %15 = arith.shrui %13, %14 : vector<2x1024xi32>
    %16 = arith.xori %13, %15 : vector<2x1024xi32>
    %c2146121005_i32 = arith.constant 2146121005 : i32
    %17 = vector.broadcast %c2146121005_i32 : i32 to vector<2x1024xi32>
    %18 = arith.muli %16, %17 : vector<2x1024xi32>
    %c15_i32 = arith.constant 15 : i32
    %19 = vector.broadcast %c15_i32 : i32 to vector<2x1024xi32>
    %20 = arith.shrui %18, %19 : vector<2x1024xi32>
    %21 = arith.xori %18, %20 : vector<2x1024xi32>
    %c8_i32 = arith.constant 8 : i32
    %22 = vector.broadcast %c8_i32 : i32 to vector<2x1024xi32>
    %23 = arith.shrui %21, %22 : vector<2x1024xi32>
    %c1677722_i32 = arith.constant 1677722 : i32
    %24 = vector.broadcast %c1677722_i32 : i32 to vector<2x1024xi32>
    %25 = arith.cmpi uge, %23, %24 : vector<2x1024xi32>
    %cst_2 = arith.constant 1.11111116 : f32
    %26 = vector.broadcast %cst_2 : f32 to vector<2x1024xf32>
    %27 = arith.mulf %2, %26 : vector<2x1024xf32>
    %cst_3 = arith.constant 0.000000e+00 : f32
    %28 = vector.broadcast %cst_3 : f32 to vector<2x1024xf32>
    %29 = arith.select %25, %27, %28 : vector<2x1024xi1>, vector<2x1024xf32>
    %c0_4 = arith.constant 0 : index
    %c0_5 = arith.constant 0 : index
    %30 = vector.load %arg3[%c0_4, %c0_5] : memref<2x1024xf32, #tpu.memory_space<vmem>>, vector<2x1024xf32>
    tpu.vector_store %arg3[%c0_4, %c0_5], %29 {strides = array<i32>} : memref<2x1024xf32, #tpu.memory_space<vmem>>, vector<2x1024xf32>,
    return
  }
  func.func @transform_0(%arg0: i32) -> i32 {
    %c0_i32 = arith.constant 0 : i32
    %c0_i32_0 = arith.constant 0 : i32
    return %c0_i32 : i32
  }
  func.func @transform_1(%arg0: i32) -> (i32, i32) {
    %c0_i32 = arith.constant 0 : i32
    %c0_i32_0 = arith.constant 0 : i32
    return %arg0, %c0_i32 : i32, i32
  }
  func.func @transform_2(%arg0: i32) -> (i32, i32) {
    %c0_i32 = arith.constant 0 : i32
    %c0_i32_0 = arith.constant 0 : i32
    return %arg0, %c0_i32 : i32, i32
  }
}

</mosaic_0001>

<bundles_post_ra>
// kernel: tpu_custom_call.1
= control target key start
LH: loop header
LB: loop body
LE: loop exit
PB: predicated region body
PF: predicated region fallthrough
CT: control target
= control target key end

     0   :  { %8 = vsyncpa [#allocation4], 0  ;;  %s405_s0 = inlined_call_operand.<no memory space> [shape: s32[1], index: 0, kind: input, shape index: {}]   ;;  %s406_s1 = inlined_call_operand.hbm [shape: f32[2,1024], index: 1, kind: input, shape index: {}]   ;;  %s407_s2 = inlined_call_operand.hbm [shape: f32[2,1024], index: 2, kind: output, shape index: {}]  }
   0x1   :  { %9 = vsyncpa [#allocation5], 0  ;;  %s344_s9 = smov [#allocation3]   ;;  %s296_s13 = scalar_lea.hbm %s406_s1, 256 }
   0x2   :  { %s18_s10 = sshll.u32 %s344_s9, 4  ;;  %p297_p0 = scmp.ne.s32.totalorder %s406_s1, %s296_s13  ;;  %s19_s10 = int_to_ptr.vmem [resolvable:$true] %s18_s10 }
   0x3   :  { %p300_p1 = scmp.lt.u32.totalorder %s296_s13, %s406_s1 }
   0x5   :  { %p302_p2 = pnand %p300_p1, %p297_p0 }
   0x7   :  { %305 = shalt.err (!%p302_p2)
}
   0x8   :  { %s306_s18 = scalar_lea.vmem %s19_s10, 256  ;;  %p311_p4 = scmp.lt.s32.totalorder %s19_s10, %s19_s10 }
   0x9   :  { %p307_p3 = scmp.ne.s32.totalorder %s19_s10, %s306_s18  ;;  %p312_p5 = scmp.lt.s32.totalorder %s306_s18, %s306_s18 }
   0xb   :  { %p313_p6 = por %p312_p5, %p311_p4 }
   0xd   :  { %p314_p7 = pnand %p313_p6, %p307_p3 }
   0xf   :  { %317 = shalt.err (!%p314_p7)
}
  0x10   :  { %21 = dma.hbm_to_vmem [thread:$0]  %s406_s1, 256, %s19_s10, [#allocation4]  }
  0x11   :  { %340 = dma.done.wait [#allocation4], 256  }
  0x12   :  { %341 = vsyncadd [#allocation4], 4294967040  ;;  %v30_v0 = vlaneseq  ;;  %v377_v1 = vstv %s405_s0  ;;  %s346_s0 = smov [#allocation6]  }
  0x13   :  { %v383_v21 = vxor.u32 466688986, %v377_v1  ;;  %s284_s1 = sshll.u32 %s346_s0, 4  ;;  %s285_s1 = int_to_ptr.vmem [resolvable:$true] %s284_s1 }
  0x14   :  { %v36_v2 = vadd.s32 %v377_v1, %v30_v0  ;;  %s318_s23 = scalar_lea.vmem %s285_s1, 256  ;;  %p323_p9 = scmp.lt.s32.totalorder %s285_s1, %s285_s1 }
  0x15   :  { %p319_p8 = scmp.ne.s32.totalorder %s285_s1, %s318_s23  ;;  %p324_p10 = scmp.lt.s32.totalorder %s318_s23, %s318_s23 }
  0x16   :  { %v37_v3 = vadd.s32 %v36_v2, %v30_v0  ;;  %v38_v4 = vshll.u32 %v36_v2, 13  ;;  %v39_v5 = vshrl.u32 %v36_v2, 19 }
  0x17   :  { %p325_p11 = por %p324_p10, %p323_p9 }
  0x18   :  { %v40_v6 = vor.u32 %v39_v5, %v38_v4 }
  0x19   :  { %p326_p12 = pnand %p325_p11, %p319_p8 }
  0x1a   :  { %v41_v7 = vxor.u32 %v40_v6, %v37_v3 }
  0x1c   :  { %v42_v8 = vadd.s32 %v41_v7, %v37_v3  ;;  %v43_v9 = vshll.u32 %v41_v7, 15  ;;  %v44_v10 = vshrl.u32 %v41_v7, 17 }
  0x1e   :  { %v45_v11 = vor.u32 %v44_v10, %v43_v9 }
  0x20   :  { %v46_v12 = vxor.u32 %v45_v11, %v42_v8 }
  0x22   :  { %v47_v13 = vadd.s32 %v46_v12, %v42_v8  ;;  %v48_v14 = vshll.u32 %v46_v12, 26  ;;  %v49_v15 = vshrl.u32 %v46_v12, 6 }
  0x24   :  { %v50_v16 = vor.u32 %v49_v15, %v48_v14 }
  0x26   :  { %v51_v17 = vxor.u32 %v50_v16, %v47_v13 }
  0x28   :  { %v52_v18 = vadd.s32 %v51_v17, %v47_v13  ;;  %v53_v19 = vshll.u32 %v51_v17, 6  ;;  %v54_v20 = vshrl.u32 %v51_v17, 26 }
  0x2a   :  { %v55_v22 = vor.u32 %v54_v20, %v53_v19  ;;  %v57_v24 = vadd.s32 %v52_v18, %v377_v1 }
  0x2c   :  { %v56_v23 = vxor.u32 %v55_v22, %v52_v18 }
  0x2e   :  { %v58_v25 = vadd.s32 %v56_v23, %v383_v21 }
  0x30   :  { %v59_v26 = vadd.s32 1, %v58_v25 }
  0x32   :  { %v60_v27 = vadd.s32 %v59_v26, %v57_v24  ;;  %v61_v28 = vshll.u32 %v59_v26, 17  ;;  %v62_v29 = vshrl.u32 %v59_v26, 15 }
  0x34   :  { %v63_v30 = vor.u32 %v62_v29, %v61_v28 }
  0x36   :  { %v64_v31 = vxor.u32 %v63_v30, %v60_v27 }
  0x38   :  { %v65_v32 = vadd.s32 %v64_v31, %v60_v27  ;;  %v66_v33 = vshll.u32 %v64_v31, 29  ;;  %v67_v34 = vshrl.u32 %v64_v31, 3 }
  0x3a   :  { %v68_v35 = vor.u32 %v67_v34, %v66_v33 }
  0x3c   :  { %v69_v36 = vxor.u32 %v68_v35, %v65_v32 }
  0x3e   :  { %v70_v37 = vadd.s32 %v69_v36, %v65_v32  ;;  %v71_v38 = vshll.u32 %v69_v36, 16  ;;  %v72_v39 = vshrl.u32 %v69_v36, 16 }
  0x40   :  { %v73_v40 = vor.u32 %v72_v39, %v71_v38 }
  0x42   :  { %v74_v41 = vxor.u32 %v73_v40, %v70_v37 }
  0x44   :  { %v75_v42 = vadd.s32 %v74_v41, %v70_v37  ;;  %v76_v43 = vshll.u32 %v74_v41, 24  ;;  %v77_v44 = vshrl.u32 %v74_v41, 8 }
  0x46   :  { %v78_v45 = vor.u32 %v77_v44, %v76_v43  ;;  %v80_v47 = vadd.s32 %v75_v42, %v383_v21 }
  0x48   :  { %v79_v46 = vxor.u32 %v78_v45, %v75_v42 }
  0x4a   :  { %v82_v48 = vadd.s32 2, %v79_v46  ;;  %v345_v46 = vmov 1983009808  }
  0x4c   :  { %v83_v49 = vadd.s32 %v82_v48, %v80_v47  ;;  %v84_v50 = vshll.u32 %v82_v48, 13  ;;  %v85_v51 = vshrl.u32 %v82_v48, 19  ;;  %v184_v47 = vunpack.c.l.s4 %v345_v46  ;;  %v25_v48 = vld [vmem:[#allocation3] sm:$0xff] }
  0x4e   :  { %v86_v52 = vor.u32 %v85_v51, %v84_v50  ;;  %v27_v50 = vmax.f32 %v25_v48, 0.0  ;;  %v185_v51 = vunpack.c.0.s8 %v184_v47 }
  0x50   :  { %v87_v53 = vxor.u32 %v86_v52, %v83_v49 }
  0x52   :  { %v88_v54 = vadd.s32 %v87_v53, %v83_v49  ;;  %v89_v55 = vshll.u32 %v87_v53, 15  ;;  %v90_v56 = vshrl.u32 %v87_v53, 17 }
  0x54   :  { %v91_v57 = vor.u32 %v90_v56, %v89_v55  ;;  %v187_v55 = vshrl.u32 %v30_v0, 7  ;;  %v26_v56 = vld [vmem:[#allocation3 + $0x8] sm:$0xff] }
  0x56   :  { %v92_v58 = vxor.u32 %v91_v57, %v88_v54 }
  0x58   :  { %v93_v59 = vadd.s32 %v92_v58, %v88_v54  ;;  %v94_v60 = vshll.u32 %v92_v58, 26  ;;  %v95_v61 = vshrl.u32 %v92_v58, 6  ;;  %v178_v58 = vmul.f32 1.1111112, %v27_v50 }
  0x5a   :  { %v96_v62 = vor.u32 %v95_v61, %v94_v60 }
  0x5c   :  { %v97_v63 = vxor.u32 %v96_v62, %v93_v59  ;;  %v188_v62 = vsub.s32 %v185_v51, %v187_v55 }
  0x5e   :  { %v98_v2 = vadd.s32 %v97_v63, %v93_v59  ;;  %v99_v3 = vshll.u32 %v97_v63, 6  ;;  %v100_v4 = vshrl.u32 %v97_v63, 26  ;;  %v28_v59 = vmax.f32 %v26_v56, 0.0 }
  0x60   :  { %v101_v5 = vor.u32 %v100_v4, %v99_v3  ;;  %v179_v3 = vmul.f32 1.1111112, %v28_v59 }
  0x62   :  { %v102_v6 = vxor.u32 %v101_v5, %v98_v2  ;;  %v189_v5 = vrot.slane %v178_v58, %v188_v62 }
  0x64   :  { %v104_v7 = vadd.s32 %v102_v6, %v377_v1  ;;  %v197_v0 = vcombine.high %v189_v5, %v189_v5 }
  0x66   :  { %v105_v8 = vadd.s32 3, %v104_v7 }
  0x68   :  { %v106_v9 = vadd.s32 %v105_v8, %v98_v2  ;;  %v107_v10 = vshll.u32 %v105_v8, 17  ;;  %v108_v11 = vshrl.u32 %v105_v8, 15  ;;  %v182_v2 = vcombine.high %v178_v58, %v178_v58 }
  0x69   :  { %v199_v8 = vcombine.high %v179_v3, %v179_v3 }
  0x6a   :  { %v109_v12 = vor.u32 %v108_v11, %v107_v10  ;;  %v196_v6 = vrot.slane %v182_v2, %v188_v62  ;;  %v206_v11 = vrot.slane %v179_v3, %v188_v62 }
  0x6c   :  { %v110_v13 = vxor.u32 %v109_v12, %v106_v9 }
  0x6e   :  { %v111_v14 = vadd.s32 %v110_v13, %v106_v9  ;;  %v112_v15 = vshll.u32 %v110_v13, 29  ;;  %v113_v16 = vshrl.u32 %v110_v13, 3 }
  0x70   :  { %v114_v17 = vor.u32 %v113_v16, %v112_v15 }
  0x72   :  { %v115_v18 = vxor.u32 %v114_v17, %v111_v14 }
  0x74   :  { %v116_v19 = vadd.s32 %v115_v18, %v111_v14  ;;  %v117_v20 = vshll.u32 %v115_v18, 16  ;;  %v118_v22 = vshrl.u32 %v115_v18, 16 }
  0x76   :  { %v119_v23 = vor.u32 %v118_v22, %v117_v20 }
  0x78   :  { %v120_v24 = vxor.u32 %v119_v23, %v116_v19 }
  0x7a   :  { %v121_v25 = vadd.s32 %v120_v24, %v116_v19  ;;  %v122_v26 = vshll.u32 %v120_v24, 24  ;;  %v123_v27 = vshrl.u32 %v120_v24, 8  ;;  %v213_v19 = vrot.slane %v199_v8, %v188_v62 }
  0x7b   :  { %v214_v24 = vcombine.high %v206_v11, %v206_v11 }
  0x7c   :  { %v124_v28 = vor.u32 %v123_v27, %v122_v26  ;;  %v126_v30 = vadd.s32 %v121_v25, %v377_v1 }
  0x7e   :  { %v125_v29 = vxor.u32 %v124_v28, %v121_v25 }
  0x80   :  { %v127_v31 = vadd.s32 %v125_v29, %v383_v21 }
  0x82   :  { %v128_v32 = vadd.s32 4, %v127_v31 }
  0x84   :  { %v129_v33 = vadd.s32 %v128_v32, %v126_v30  ;;  %v130_v34 = vshll.u32 %v128_v32, 13  ;;  %v131_v35 = vshrl.u32 %v128_v32, 19 }
  0x86   :  { %v132_v36 = vor.u32 %v131_v35, %v130_v34  ;;  %v215_v34 = vcombine.high %v213_v19, %v213_v19 }
  0x88   :  { %v133_v37 = vxor.u32 %v132_v36, %v129_v33 }
  0x8a   :  { %v134_v38 = vadd.s32 %v133_v37, %v129_v33  ;;  %v135_v39 = vshll.u32 %v133_v37, 15  ;;  %v136_v40 = vshrl.u32 %v133_v37, 17 }
  0x8c   :  { %v137_v41 = vor.u32 %v136_v40, %v135_v39 }
  0x8e   :  { %v138_v42 = vxor.u32 %v137_v41, %v134_v38 }
  0x90   :  { %v139_v43 = vadd.s32 %v138_v42, %v134_v38  ;;  %v140_v44 = vshll.u32 %v138_v42, 26  ;;  %v141_v45 = vshrl.u32 %v138_v42, 6 }
  0x92   :  { %v142_v1 = vor.u32 %v141_v45, %v140_v44 }
  0x94   :  { %v143_v49 = vxor.u32 %v142_v1, %v139_v43 }
  0x96   :  { %v144_v52 = vadd.s32 %v143_v49, %v139_v43  ;;  %v145_v53 = vshll.u32 %v143_v49, 6  ;;  %v146_v54 = vshrl.u32 %v143_v49, 26 }
  0x98   :  { %v147_v57 = vor.u32 %v146_v54, %v145_v53  ;;  %v149_v61 = vadd.s32 %v144_v52, %v383_v21  ;;  %v198_v21 = vcombine.high %v196_v6, %v196_v6 }
  0x9a   :  { %v148_v60 = vxor.u32 %v147_v57, %v144_v52 }
  0x9c   :  { %v151_v63 = vadd.s32 5, %v148_v60 }
  0x9e   :  { %v152_v4 = vxor.u32 %v151_v63, %v149_v61 }
  0xa0   :  { %153 = set.rngseed %v152_v4 }
  0xa1   :  { %v154_v7 = vrng }
  0xa2   :  { %v162_v9 = vshrl.u32 %v154_v7, 8  ;;  %v155_v10 = vrng }
  0xa3   :  { %v163_v12 = vshrl.u32 %v155_v10, 8  ;;  %v156_v13 = vrng }
  0xa4   :  { %vm170_vm0 = vcmp.ge.u32.totalorder %v162_v9, 1677722  ;;  %v164_v14 = vshrl.u32 %v156_v13, 8  ;;  %v157_v15 = vrng }
  0xa5   :  { %v224_v16 = vsel %vm170_vm0, %v189_v5, 0.0  ;;  %vm171_vm1 = vcmp.ge.u32.totalorder %v163_v12, 1677722  ;;  %v165_v17 = vshrl.u32 %v157_v15, 8  ;;  %v158_v18 = vrng }
  0xa6   :  { %v225_v20 = vsel %vm171_vm1, %v197_v0, 0.0  ;;  %vm172_vm2 = vcmp.ge.u32.totalorder %v164_v14, 1677722  ;;  %v166_v22 = vshrl.u32 %v158_v18, 8  ;;  %v159_v23 = vrng }
  0xa7   :  { %v240_v25 = vcombine.low %v224_v16, %v225_v20  ;;  %v226_v26 = vsel %vm172_vm2, %v196_v6, 0.0  ;;  %vm173_vm3 = vcmp.ge.u32.totalorder %v165_v17, 1677722  ;;  %v167_v27 = vshrl.u32 %v159_v23, 8  ;;  %v160_v28 = vrng }
  0xa8   :  { %v227_v29 = vsel %vm173_vm3, %v198_v21, 0.0  ;;  %vm174_vm4 = vcmp.ge.u32.totalorder %v166_v22, 1677722  ;;  %v168_v30 = vshrl.u32 %v160_v28, 8  ;;  %v161_v31 = vrng }
  0xa9   :  { %v241_v32 = vcombine.low %v226_v26, %v227_v29  ;;  %v228_v33 = vsel %vm174_vm4, %v206_v11, 0.0  ;;  %vm175_vm5 = vcmp.ge.u32.totalorder %v167_v27, 1677722  ;;  %v169_v36 = vshrl.u32 %v161_v31, 8 }
  0xaa   :  { %v229_v35 = vsel %vm175_vm5, %v214_v24, 0.0  ;;  %vm176_vm6 = vcmp.ge.u32.totalorder %v168_v30, 1677722  ;;  %v248_v37 = vrot.slane %v240_v25, %v188_v62 }
  0xab   :  { %v255_v38 = vrot.slane %v241_v32, %v188_v62  ;;  %v230_v39 = vsel %vm176_vm6, %v213_v19, 0.0  ;;  %v257_v40 = vcombine.low %v228_v33, %v229_v35  ;;  %vm177_vm7 = vcmp.ge.u32.totalorder %v169_v36, 1677722 }
  0xac   :  { %v231_v41 = vsel %vm177_vm7, %v215_v34, 0.0 }
  0xad   :  { %v256_v42 = vcombine.low %v248_v37, %v255_v38  ;;  %v258_v43 = vcombine.low %v230_v39, %v231_v41  ;;  %v265_v44 = vrot.slane %v257_v40, %v188_v62 }
  0xaf   :  { %276 = vst [vmem:[#allocation6] sm:$0xff] %v256_v42  ;;  %v272_v45 = vrot.slane %v258_v43, %v188_v62 }
  0xb1   :  { %v273_v46 = vcombine.low %v265_v44, %v272_v45 }
  0xb3   :  { %277 = vst [vmem:[#allocation6 + $0x8] sm:$0xff] %v273_v46 }
  0xb4   :  { %329 = shalt.err (!%p326_p12)
}
  0xb5   :  { %s330_s26 = scalar_lea.hbm %s407_s2, 256 }
  0xb6   :  { %p331_p13 = scmp.ne.s32.totalorder %s407_s2, %s330_s26  ;;  %p334_p0 = scmp.lt.u32.totalorder %s330_s26, %s407_s2 }
  0xb8   :  { %p336_p1 = pnand %p334_p0, %p331_p13 }
  0xba   :  { %339 = shalt.err (!%p336_p1)
}
  0xbb   :  { %287 = dma.vmem_to_hbm [thread:$0]  %s285_s1, 256, %s407_s2, [#allocation5]  }
  0xbc   :  { %342 = dma.done.wait [#allocation5], 256  }
  0xbd   :  { %343 = vsyncadd [#allocation5], 4294967040 }
  0xbe   :  { %291 = vsyncpa [#allocation4], 1 }
  0xbf   :  { %292 = vsyncpa [#allocation5], 1 }

// kernel: tpu_custom_call.1
= control target key start
LH: loop header
LB: loop body
LE: loop exit
PB: predicated region body
PF: predicated region fallthrough
CT: control target
= control target key end

     0   :  { %8 = vsyncpa [#allocation4], 0  ;;  %s351_s0 = inlined_call_operand.<no memory space> [shape: s32[1], index: 0, kind: input, shape index: {}]   ;;  %s352_s1 = inlined_call_operand.hbm [shape: f32[2,1024], index: 1, kind: input, shape index: {}]   ;;  %s353_s2 = inlined_call_operand.hbm [shape: f32[2,1024], index: 2, kind: output, shape index: {}]  }
   0x1   :  { %9 = vsyncpa [#allocation5], 0  ;;  %s291_s9 = smov [#allocation3]   ;;  %s243_s13 = scalar_lea.hbm %s352_s1, 256 }
   0x2   :  { %s18_s10 = sshll.u32 %s291_s9, 4  ;;  %p244_p0 = scmp.ne.s32.totalorder %s352_s1, %s243_s13  ;;  %s19_s10 = int_to_ptr.vmem [resolvable:$true] %s18_s10 }
   0x3   :  { %p247_p1 = scmp.lt.u32.totalorder %s243_s13, %s352_s1 }
   0x5   :  { %p249_p2 = pnand %p247_p1, %p244_p0 }
   0x7   :  { %252 = shalt.err (!%p249_p2)
}
   0x8   :  { %s253_s18 = scalar_lea.vmem %s19_s10, 256  ;;  %p258_p4 = scmp.lt.s32.totalorder %s19_s10, %s19_s10 }
   0x9   :  { %p254_p3 = scmp.ne.s32.totalorder %s19_s10, %s253_s18  ;;  %p259_p5 = scmp.lt.s32.totalorder %s253_s18, %s253_s18 }
   0xb   :  { %p260_p6 = por %p259_p5, %p258_p4 }
   0xd   :  { %p261_p7 = pnand %p260_p6, %p254_p3 }
   0xf   :  { %264 = shalt.err (!%p261_p7)
}
  0x10   :  { %21 = dma.hbm_to_vmem [thread:$0]  %s352_s1, 256, %s19_s10, [#allocation4]  }
  0x11   :  { %287 = dma.done.wait [#allocation4], 256  }
  0x12   :  { %288 = vsyncadd [#allocation4], 4294967040  ;;  %v30_v0 = vlaneseq  ;;  %v292_v1 = vmov 1983009808   ;;  %v60_v5 = vstv %s351_s0  ;;  %v25_v19 = vld [vmem:[#allocation3] sm:$0xff]  ;;  %v326_v20 = vld [vmem:[#allocation3 + $0x8] sm:$0xff] }
  0x13   :  { %v131_v2 = vunpack.c.l.s4 %v292_v1  ;;  %v27_v25 = vmax.f32 %v25_v19, 0.0  ;;  %v28_v30 = vmax.f32 %v326_v20, 0.0  ;;  %s293_s0 = smov [#allocation6]  }
  0x14   :  { %v31_v3 = vshrl.u32 %v30_v0, 7  ;;  %v33_v4 = vand.u32 127, %v30_v0  ;;  %s231_s1 = sshll.u32 %s293_s0, 4  ;;  %s232_s1 = int_to_ptr.vmem [resolvable:$true] %s231_s1 }
  0x15   :  { %v132_v6 = vunpack.c.0.s8 %v131_v2  ;;  %v125_v36 = vmul.f32 1.1111112, %v27_v25  ;;  %s265_s23 = scalar_lea.vmem %s232_s1, 256  ;;  %p270_p9 = scmp.lt.s32.totalorder %s232_s1, %s232_s1 }
  0x16   :  { %v34_v7 = vadd.s32 128, %v33_v4  ;;  %v35_v8 = vadd.s32 256, %v33_v4  ;;  %v36_v9 = vadd.s32 384, %v33_v4  ;;  %v41_v10 = vmul.u32 1024, %v31_v3  ;;  %p266_p8 = scmp.ne.s32.totalorder %s232_s1, %s265_s23  ;;  %p271_p10 = scmp.lt.s32.totalorder %s265_s23, %s265_s23 }
  0x17   :  { %v324_v11 = vsub.s32 %v132_v6, %v31_v3  ;;  %v37_v12 = vadd.s32 512, %v33_v4  ;;  %v38_v13 = vadd.s32 640, %v33_v4  ;;  %v39_v14 = vadd.s32 768, %v33_v4 }
  0x18   :  { %v42_v15 = vadd.s32 %v41_v10, %v33_v4  ;;  %v43_v16 = vadd.s32 %v41_v10, %v34_v7  ;;  %v44_v17 = vadd.s32 %v41_v10, %v35_v8  ;;  %v45_v18 = vadd.s32 %v41_v10, %v36_v9  ;;  %p272_p11 = por %p271_p10, %p270_p9 }
  0x19   :  { %v40_v21 = vadd.s32 896, %v33_v4  ;;  %v46_v22 = vadd.s32 %v41_v10, %v37_v12  ;;  %v47_v23 = vadd.s32 %v41_v10, %v38_v13  ;;  %v48_v24 = vadd.s32 %v41_v10, %v39_v14 }
  0x1a   :  { %v61_v26 = vxor.u32 %v60_v5, %v42_v15  ;;  %v62_v27 = vxor.u32 %v60_v5, %v43_v16  ;;  %v63_v28 = vxor.u32 %v60_v5, %v44_v17  ;;  %v64_v29 = vxor.u32 %v60_v5, %v45_v18  ;;  %p273_p12 = pnand %p272_p11, %p266_p8 }
  0x1b   :  { %v49_v31 = vadd.s32 %v41_v10, %v40_v21  ;;  %v65_v32 = vxor.u32 %v60_v5, %v46_v22  ;;  %v66_v38 = vxor.u32 %v60_v5, %v47_v23  ;;  %v67_v39 = vxor.u32 %v60_v5, %v48_v24 }
  0x1c   :  { %v69_v33 = vshrl.u32 %v61_v26, 16  ;;  %v70_v34 = vshrl.u32 %v62_v27, 16  ;;  %v71_v35 = vshrl.u32 %v63_v28, 16  ;;  %v72_v37 = vshrl.u32 %v64_v29, 16 }
  0x1d   :  { %v68_v40 = vxor.u32 %v60_v5, %v49_v31  ;;  %v129_v44 = vcombine.high %v125_v36, %v125_v36  ;;  %v136_v46 = vrot.slane %v125_v36, %v324_v11  ;;  %v73_v47 = vshrl.u32 %v65_v32, 16 }
  0x1e   :  { %v77_v41 = vxor.u32 %v69_v33, %v61_v26  ;;  %v78_v42 = vxor.u32 %v70_v34, %v62_v27  ;;  %v79_v43 = vxor.u32 %v71_v35, %v63_v28  ;;  %v80_v45 = vxor.u32 %v72_v37, %v64_v29 }
  0x1f   :  { %v74_v48 = vshrl.u32 %v66_v38, 16  ;;  %v143_v51 = vrot.slane %v129_v44, %v324_v11  ;;  %v75_v52 = vshrl.u32 %v67_v39, 16  ;;  %v144_v55 = vcombine.high %v136_v46, %v136_v46 }
  0x20   :  { %v85_v49 = vmul.u32 2146121005, %v77_v41  ;;  %v86_v50 = vmul.u32 2146121005, %v78_v42  ;;  %v76_v56 = vshrl.u32 %v68_v40, 16  ;;  %v81_v60 = vxor.u32 %v73_v47, %v65_v32 }
  0x21   :  { %v87_v53 = vmul.u32 2146121005, %v79_v43  ;;  %v88_v54 = vmul.u32 2146121005, %v80_v45  ;;  %v145_v59 = vcombine.high %v143_v51, %v143_v51  ;;  %v82_v63 = vxor.u32 %v74_v48, %v66_v38 }
  0x22   :  { %v93_v57 = vshrl.u32 %v85_v49, 15  ;;  %v94_v58 = vshrl.u32 %v86_v50, 15  ;;  %v83_v0 = vxor.u32 %v75_v52, %v67_v39  ;;  %v84_v3 = vxor.u32 %v76_v56, %v68_v40 }
  0x23   :  { %v95_v61 = vshrl.u32 %v87_v53, 15  ;;  %v96_v62 = vshrl.u32 %v88_v54, 15  ;;  %v89_v4 = vmul.u32 2146121005, %v81_v60  ;;  %v90_v7 = vmul.u32 2146121005, %v82_v63 }
  0x24   :  { %v101_v1 = vxor.u32 %v93_v57, %v85_v49  ;;  %v102_v2 = vxor.u32 %v94_v58, %v86_v50  ;;  %v91_v8 = vmul.u32 2146121005, %v83_v0  ;;  %v92_v12 = vmul.u32 2146121005, %v84_v3 }
  0x25   :  { %v103_v5 = vxor.u32 %v95_v61, %v87_v53  ;;  %v104_v6 = vxor.u32 %v96_v62, %v88_v54  ;;  %v97_v13 = vshrl.u32 %v89_v4, 15  ;;  %v98_v16 = vshrl.u32 %v90_v7, 15 }
  0x26   :  { %v109_v9 = vshrl.u32 %v101_v1, 8  ;;  %v110_v10 = vshrl.u32 %v102_v2, 8  ;;  %v99_v17 = vshrl.u32 %v91_v8, 15  ;;  %v100_v18 = vshrl.u32 %v92_v12, 15 }
  0x27   :  { %v111_v14 = vshrl.u32 %v103_v5, 8  ;;  %v112_v15 = vshrl.u32 %v104_v6, 8  ;;  %v105_v19 = vxor.u32 %v97_v13, %v89_v4  ;;  %v106_v26 = vxor.u32 %v98_v16, %v90_v7 }
  0x28   :  { %vm117_vm0 = vcmp.ge.u32.totalorder %v109_v9, 1677722  ;;  %vm118_vm1 = vcmp.ge.u32.totalorder %v110_v10, 1677722  ;;  %v107_v28 = vxor.u32 %v99_v17, %v91_v8  ;;  %v108_v29 = vxor.u32 %v100_v18, %v92_v12 }
  0x29   :  { %vm119_vm2 = vcmp.ge.u32.totalorder %v111_v14, 1677722  ;;  %vm120_vm3 = vcmp.ge.u32.totalorder %v112_v15, 1677722  ;;  %v171_v21 = vsel %vm117_vm0, %v136_v46, 0.0  ;;  %v172_v22 = vsel %vm118_vm1, %v144_v55, 0.0 }
  0x2a   :  { %v173_v23 = vsel %vm119_vm2, %v143_v51, 0.0  ;;  %v174_v24 = vsel %vm120_vm3, %v145_v59, 0.0  ;;  %v187_v25 = vcombine.low %v171_v21, %v172_v22  ;;  %v113_v31 = vshrl.u32 %v105_v19, 8 }
  0x2b   :  { %v188_v27 = vcombine.low %v173_v23, %v174_v24  ;;  %v114_v33 = vshrl.u32 %v106_v26, 8  ;;  %v126_v34 = vmul.f32 1.1111112, %v28_v30  ;;  %v115_v36 = vshrl.u32 %v107_v28, 8 }
  0x2c   :  { %v195_v32 = vrot.slane %v187_v25, %v324_v11  ;;  %v116_v37 = vshrl.u32 %v108_v29, 8  ;;  %vm121_vm4 = vcmp.ge.u32.totalorder %v113_v31, 1677722 }
  0x2d   :  { %v202_v35 = vrot.slane %v188_v27, %v324_v11  ;;  %v146_v38 = vcombine.high %v126_v34, %v126_v34  ;;  %v153_v39 = vrot.slane %v126_v34, %v324_v11  ;;  %vm122_vm5 = vcmp.ge.u32.totalorder %v114_v33, 1677722 }
  0x2e   :  { %vm123_vm6 = vcmp.ge.u32.totalorder %v115_v36, 1677722  ;;  %vm124_vm7 = vcmp.ge.u32.totalorder %v116_v37, 1677722 }
  0x2f   :  { %v203_v40 = vcombine.low %v195_v32, %v202_v35  ;;  %v160_v41 = vrot.slane %v146_v38, %v324_v11  ;;  %v161_v42 = vcombine.high %v153_v39, %v153_v39  ;;  %v175_v43 = vsel %vm121_vm4, %v153_v39, 0.0 }
  0x31   :  { %223 = vst [vmem:[#allocation6] sm:$0xff] %v203_v40  ;;  %v162_v44 = vcombine.high %v160_v41, %v160_v41  ;;  %v176_v20 = vsel %vm122_vm5, %v161_v42, 0.0  ;;  %v177_v30 = vsel %vm123_vm6, %v160_v41, 0.0 }
  0x32   :  { %v204_v45 = vcombine.low %v175_v43, %v176_v20 }
  0x33   :  { %v178_v46 = vsel %vm124_vm7, %v162_v44, 0.0 }
  0x34   :  { %v205_v47 = vcombine.low %v177_v30, %v178_v46  ;;  %v212_v48 = vrot.slane %v204_v45, %v324_v11 }
  0x36   :  { %v219_v49 = vrot.slane %v205_v47, %v324_v11 }
  0x38   :  { %v220_v50 = vcombine.low %v212_v48, %v219_v49 }
  0x3a   :  { %224 = vst [vmem:[#allocation6 + $0x8] sm:$0xff] %v220_v50 }
  0x3b   :  { %276 = shalt.err (!%p273_p12)
}
  0x3c   :  { %s277_s26 = scalar_lea.hbm %s353_s2, 256 }
  0x3d   :  { %p278_p13 = scmp.ne.s32.totalorder %s353_s2, %s277_s26  ;;  %p281_p0 = scmp.lt.u32.totalorder %s277_s26, %s353_s2 }
  0x3f   :  { %p283_p1 = pnand %p281_p0, %p278_p13 }
  0x41   :  { %286 = shalt.err (!%p283_p1)
}
  0x42   :  { %234 = dma.vmem_to_hbm [thread:$0]  %s232_s1, 256, %s353_s2, [#allocation5]  }
  0x43   :  { %289 = dma.done.wait [#allocation5], 256  }
  0x44   :  { %290 = vsyncadd [#allocation5], 4294967040 }
  0x45   :  { %238 = vsyncpa [#allocation4], 1 }
  0x46   :  { %239 = vsyncpa [#allocation5], 1 }

</bundles_post_ra>
